<compile_context>
chip_gen: v7x
topology: tpu7x:2x2x1
jax: 0.10.0
libtpu: 0.0.40
codegen_flags: <defaults>
</compile_context>

<pallas_src>
import jax
import jax.numpy as jnp
from jax.experimental import pallas as pl
from jax.experimental.pallas import tpu as pltpu


# ----------------------------- config ("conf") ------------------------------
EMBEDDING_DIM = 32      # conf.embedding_dim (free user/item embeddings)
WORD_DIM = 32           # conf.word_dimension
NUM_ASPECTS = 8         # aspect count (transform_W output / transform_T input)
NUM_USERS = 16          # conf.num_users
NUM_ITEMS = 16          # conf.num_items
VOCAB_SZ = 64           # conf.vocab_sz
AVG_RATING = 3.5        # conf.avg_rating

SEQ_LEN = 8             # words per historical review
NUM_REVIEWS = 8         # number of historical reviews in this batch
BATCH = 2               # user-item pairs
HIST = 3                # historical reviews per user / item

OUT_LANES = 128         # lane-dense prediction output slab


def _r8(x):
    """Round up to a multiple of 8 (sublane granularity)."""
    return -(-x // 8) * 8


# ---- packed weight-slab row offsets (all starts are multiples of 8) ---------
_ROW_MW = 0                                   # M_w   (D, D)
_ROW_WT = _ROW_MW + WORD_DIM                  # W_w.T (D, A)
_ROW_TT = _ROW_WT + WORD_DIM                  # T_w.T (A, D)
_ROW_WB = _ROW_TT + _r8(NUM_ASPECTS)          # W_b   (1, A)
_ROW_TB = _ROW_WB + 8                         # T_b   (1, D)
_W_ROWS = _ROW_TB + 8                         # = 88
_W_COLS = WORD_DIM                            # = 32

# ---- packed aux-slab row offsets ---------------------------------------------
_ROW_P = 0                                    # P_user rows [0,B), P_item rows [B,2B)
_ROW_FREE = _r8(2 * BATCH)                    # user_free rows [8,8+B), item_free [8+B,8+2B)
_AUX_ROWS = _ROW_FREE + _r8(2 * BATCH)        # = 16
_AUX_COLS = max(NUM_REVIEWS, EMBEDDING_DIM)   # = 32


# ------------------------------ Pallas kernel --------------------------------
def aspect_rating_kernel(ew_ref, y_ref, w_ref, aux_ref, out_ref):
    """Aspect extraction + history pooling + rating head, one invocation.

    ew_ref  : (2N, L, D)  rows [0,N)  = e_w natural layout (for dx),
                          rows [N,2N) = torch-faithful e_w.view(N,D,L)
                                        reinterpretation, swapped so D is on lanes
    y_ref   : (N, D)      "positive" summary vectors y_s
    w_ref   : (88, 32)    packed [M_w | W_w.T | T_w.T | W_b | T_b] slab
    aux_ref : (16, 32)    packed [P_user; P_item | user_free; item_free] slab
    out_ref : (B, 128)    lane-dense prediction slab (value broadcast on lanes)
    """
    two_n, L, D = ew_ref.shape
    N = two_n // 2
    A = NUM_ASPECTS
    B = out_ref.shape[0]
    E = EMBEDDING_DIM

    ew = ew_ref[:N]                                                  # (N, L, D)
    ewv = ew_ref[N:]                                                 # (N, L, D)
    y = y_ref[...]                                                   # (N, D)

    # static views into the packed weight slab (zero-cost slicing)
    Mw = w_ref[_ROW_MW:_ROW_MW + D, :]                               # (D, D)
    Wt = w_ref[_ROW_WT:_ROW_WT + D, :A]                              # (D, A)
    Tt = w_ref[_ROW_TT:_ROW_TT + A, :]                               # (A, D)
    Wb = w_ref[_ROW_WB:_ROW_WB + 1, :A]                              # (1, A)
    Tb = w_ref[_ROW_TB:_ROW_TB + 1, :]                               # (1, D)

    # dx[n,l] = <M·e_w[n,l] + M_b, y[n]> = e_w[n,l,:]·(y[n]@M) + const_n.
    # const_n cancels in the softmax over l, so transform_M's big matmul and
    # its bias are eliminated; only v = y @ M remains.
    v = jnp.dot(y, Mw, preferred_element_type=jnp.float32)           # (N, D)
    dx = jnp.sum(ew * v[:, None, :], axis=-1)                        # (N, L)

    # attention softmax over words (torch dim=1)
    dmax = jnp.max(dx, axis=-1, keepdims=True)
    ex = jnp.exp(dx - dmax)
    ax = ex * pl.reciprocal(jnp.sum(ex, axis=-1, keepdims=True), approx=True)  # (N, L)

    # z_s = matmul(e_w.view(N, D, L), ax): the memory reinterpretation was done
    # in the wrapper; here it is a broadcast-multiply + sublane reduction.
    z = jnp.sum(ewv * ax[:, :, None], axis=1)                        # (N, D)

    # p_t = softmax(transform_W(z_s), dim=1)
    logits = jnp.dot(z, Wt, preferred_element_type=jnp.float32) + Wb  # (N, A)
    lmax = jnp.max(logits, axis=-1, keepdims=True)
    el = jnp.exp(logits - lmax)
    p_t = el * pl.reciprocal(jnp.sum(el, axis=-1, keepdims=True), approx=True)  # (N, A)

    # r_s = transform_T(p_t)
    r_s = jnp.dot(p_t, Tt, preferred_element_type=jnp.float32) + Tb  # (N, D)

    # history mean pooling (one-hot averaging matrices) + rating head, fused so
    # r_s never round-trips through HBM.
    P_all = aux_ref[_ROW_P:_ROW_P + 2 * B, :N]                       # (2B, N)
    free = aux_ref[_ROW_FREE:_ROW_FREE + 2 * B, :E]                  # (2B, E)

    pooled = jnp.dot(P_all, r_s, preferred_element_type=jnp.float32)  # (2B, D)
    ua, ia = pooled[:B], pooled[B:]                                  # (B, D) each
    uf, itf = free[:B], free[B:]                                     # (B, E) each

    pred = (jnp.sum(ua * ia, axis=-1, keepdims=True)
            + jnp.sum(uf * itf, axis=-1, keepdims=True)
            + jnp.float32(AVG_RATING))                               # (B, 1)

    # single lane-dense store of the whole output
    out_ref[...] = jnp.broadcast_to(pred, out_ref.shape)             # (B, 128)


# ------------------------------- wrappers -----------------------------------
def _pack_weight_slab(params):
    """Pack M_w, W_w.T, W_b, T_w.T, T_b into one (88, 32) sublane-stacked slab."""
    D, A = WORD_DIM, NUM_ASPECTS
    slab = jnp.zeros((_W_ROWS, _W_COLS), jnp.float32)
    slab = slab.at[_ROW_MW:_ROW_MW + D, :].set(params["M_w"])
    slab = slab.at[_ROW_WT:_ROW_WT + D, :A].set(params["W_w"].T)
    slab = slab.at[_ROW_TT:_ROW_TT + A, :].set(params["T_w"].T)
    slab = slab.at[_ROW_WB, :A].set(params["W_b"])
    slab = slab.at[_ROW_TB, :].set(params["T_b"])
    # NOTE: params["M_b"] is algebraically eliminated (cancels in the softmax).
    return slab


def _pack_aux_slab(P_user, P_item, user_free, item_free):
    """Pack pooling matrices and free embeddings into one (16, 32) slab."""
    B, N = P_user.shape
    E = user_free.shape[1]
    slab = jnp.zeros((_AUX_ROWS, _AUX_COLS), jnp.float32)
    slab = slab.at[_ROW_P:_ROW_P + B, :N].set(P_user)
    slab = slab.at[_ROW_P + B:_ROW_P + 2 * B, :N].set(P_item)
    slab = slab.at[_ROW_FREE:_ROW_FREE + B, :E].set(user_free)
    slab = slab.at[_ROW_FREE + B:_ROW_FREE + 2 * B, :E].set(item_free)
    return slab


@jax.jit
def aspect_rs_forward(params, user, item, user_histor_idx, item_histor_idx,
                      historical_review, historical_review_positive,
                      historical_review_negative, label):
    del historical_review_negative  # unused in the reference rating branch

    # word-embedding gather (glue)
    e_w = params["word_embedding"][historical_review]                # (N, L, D)
    N, L, D = e_w.shape

    # one-time HBM-side layout work:
    #   rows [0,N)  : natural e_w (for the dx dot-product)
    #   rows [N,2N) : torch-faithful e_w.view(N, D, L) reinterpretation (NOT a
    #                 transpose of e_w), swapped so the feature dim D maps to lanes
    ewv_t = jnp.swapaxes(e_w.reshape(N, D, L), 1, 2)                 # (N, L, D)
    ew_slab = jnp.concatenate([e_w, ewv_t], axis=0)                  # (2N, L, D)

    # history mean-pooling as (B, N) one-hot averaging matrices
    P_user = jnp.mean(jax.nn.one_hot(user_histor_idx, N, dtype=jnp.float32), axis=1)
    P_item = jnp.mean(jax.nn.one_hot(item_histor_idx, N, dtype=jnp.float32), axis=1)

    # free (MF) embedding gathers (glue)
    user_free = params["embedding_user"][user]                       # (B, E)
    item_free = params["embedding_item"][item]                       # (B, E)

    w_slab = _pack_weight_slab(params)
    aux_slab = _pack_aux_slab(P_user, P_item, user_free, item_free)

    out = pl.pallas_call(
        aspect_rating_kernel,
        out_shape=jax.ShapeDtypeStruct((BATCH, OUT_LANES), jnp.float32),
        in_specs=[pl.BlockSpec(memory_space=pltpu.MemorySpace.VMEM)] * 4,
        out_specs=pl.BlockSpec(memory_space=pltpu.MemorySpace.VMEM),
    )(ew_slab, historical_review_positive, w_slab, aux_slab)

    prediction = out[:, 0]                                           # (B,)

    # rating MSE loss (glue)
    rating_loss = jnp.mean((prediction - label) ** 2)
    # TODO(synk): review_loss (rnn + AdaptiveLogSoftmaxWithLoss) not translated.
    loss = rating_loss
    return prediction, loss


# ------------------------------ parameters ----------------------------------
def init_params(key):
    ks = jax.random.split(key, 8)
    scale = 0.1
    return {
        "word_embedding": scale * jax.random.normal(ks[0], (VOCAB_SZ, WORD_DIM), jnp.float32),
        "embedding_user": scale * jax.random.normal(ks[1], (NUM_USERS, EMBEDDING_DIM), jnp.float32),
        "embedding_item": scale * jax.random.normal(ks[2], (NUM_ITEMS, EMBEDDING_DIM), jnp.float32),
        # transform_M : Linear(D, D) — M_b kept for module faithfulness but it
        # cancels in the attention softmax and is not used by the kernel.
        "M_w": scale * jax.random.normal(ks[3], (WORD_DIM, WORD_DIM), jnp.float32),
        "M_b": jnp.zeros((WORD_DIM,), jnp.float32),
        # transform_W : Linear(D, A)
        "W_w": scale * jax.random.normal(ks[4], (NUM_ASPECTS, WORD_DIM), jnp.float32),
        "W_b": jnp.zeros((NUM_ASPECTS,), jnp.float32),
        # transform_T : Linear(A, D)
        "T_w": scale * jax.random.normal(ks[5], (WORD_DIM, NUM_ASPECTS), jnp.float32),
        "T_b": jnp.zeros((WORD_DIM,), jnp.float32),
    }


# --------------------------------- main --------------------------------------
if __name__ == "__main__":
    key = jax.random.PRNGKey(0)
    params = init_params(key)

    k1, k2, k3, k4, k5, k6, k7 = jax.random.split(jax.random.PRNGKey(0), 7)
    user = jax.random.randint(k1, (BATCH,), 0, NUM_USERS, jnp.int32)
    item = jax.random.randint(k2, (BATCH,), 0, NUM_ITEMS, jnp.int32)
    historical_review = jax.random.randint(k3, (NUM_REVIEWS, SEQ_LEN), 0, VOCAB_SZ, jnp.int32)
    historical_review_positive = jax.random.normal(k4, (NUM_REVIEWS, WORD_DIM), jnp.float32)
    historical_review_negative = jax.random.normal(k5, (NUM_REVIEWS, WORD_DIM), jnp.float32)
    user_histor_idx = jax.random.randint(k6, (BATCH, HIST), 0, NUM_REVIEWS, jnp.int32)
    item_histor_idx = jax.random.randint(k7, (BATCH, HIST), 0, NUM_REVIEWS, jnp.int32)
    label = jnp.array([4.0, 2.0], jnp.float32)

    prediction, loss = aspect_rs_forward(
        params, user, item, user_histor_idx, item_histor_idx,
        historical_review, historical_review_positive,
        historical_review_negative, label)

    jax.block_until_ready((prediction, loss))
    assert prediction.shape == (BATCH,)
    assert bool(jnp.isfinite(loss))
    print("KERNEL_OK")
</pallas_src>

<mosaic_0001>
module attributes {stable_mosaic.version = 11 : i64} {
  func.func @aspect_rating_kernel(%arg0: memref<16x8x32xf32, #tpu.memory_space<vmem>>, %arg1: memref<8x32xf32, #tpu.memory_space<vmem>>, %arg2: memref<88x32xf32, #tpu.memory_space<vmem>>, %arg3: memref<16x32xf32, #tpu.memory_space<vmem>>, %arg4: memref<2x128xf32, #tpu.memory_space<vmem>>) attributes {dimension_semantics = [], scalar_prefetch = 0 : i64, scratch_operands = 0 : i64, tpu.core_type = #tpu.core_type<tc>} {
    %c0 = arith.constant 0 : index
    %c0_0 = arith.constant 0 : index
    %c0_1 = arith.constant 0 : index
    %0 = vector.load %arg0[%c0, %c0_0, %c0_1] : memref<16x8x32xf32, #tpu.memory_space<vmem>>, vector<8x8x32xf32>
    %c8 = arith.constant 8 : index
    %c0_2 = arith.constant 0 : index
    %c0_3 = arith.constant 0 : index
    %1 = vector.load %arg0[%c8, %c0_2, %c0_3] : memref<16x8x32xf32, #tpu.memory_space<vmem>>, vector<8x8x32xf32>
    %c0_4 = arith.constant 0 : index
    %c0_5 = arith.constant 0 : index
    %2 = vector.load %arg1[%c0_4, %c0_5] : memref<8x32xf32, #tpu.memory_space<vmem>>, vector<8x32xf32>
    %c0_6 = arith.constant 0 : index
    %c0_7 = arith.constant 0 : index
    %3 = vector.load %arg2[%c0_6, %c0_7] : memref<88x32xf32, #tpu.memory_space<vmem>>, vector<32x32xf32>
    %c32 = arith.constant 32 : index
    %c0_8 = arith.constant 0 : index
    %4 = vector.load %arg2[%c32, %c0_8] : memref<88x32xf32, #tpu.memory_space<vmem>>, vector<32x8xf32>
    %c64 = arith.constant 64 : index
    %c0_9 = arith.constant 0 : index
    %5 = vector.load %arg2[%c64, %c0_9] : memref<88x32xf32, #tpu.memory_space<vmem>>, vector<8x32xf32>
    %c72 = arith.constant 72 : index
    %c0_10 = arith.constant 0 : index
    %6 = vector.load %arg2[%c72, %c0_10] : memref<88x32xf32, #tpu.memory_space<vmem>>, vector<1x8xf32>
    %c80 = arith.constant 80 : index
    %c0_11 = arith.constant 0 : index
    %7 = vector.load %arg2[%c80, %c0_11] : memref<88x32xf32, #tpu.memory_space<vmem>>, vector<1x32xf32>
    %cst = arith.constant dense<0.000000e+00> : vector<8x32xf32>
    %8 = tpu.matmul %2, %3, %cst {dimension_numbers = #tpu.dot_dimension_numbers<[1], [0], [0], [1], [0, 0, 1, 1], [], []>} : vector<8x32xf32>, vector<32x32xf32>, vector<8x32xf32> -> vector<8x32xf32>
    %9 = vector.shape_cast %8 : vector<8x32xf32> to vector<8x1x32xf32>
    %10 = vector.broadcast %9 : vector<8x1x32xf32> to vector<8x8x32xf32>
    %11 = arith.mulf %0, %10 : vector<8x8x32xf32>
    %cst_12 = arith.constant dense<0.000000e+00> : vector<8x8xf32>
    %12 = vector.multi_reduction <add>, %11, %cst_12 [2] : vector<8x8x32xf32> to vector<8x8xf32>
    %cst_13 = arith.constant dense<0xFF800000> : vector<8xf32>
    %13 = vector.multi_reduction <maximumf>, %12, %cst_13 [1] : vector<8x8xf32> to vector<8xf32>
    %14 = vector.shape_cast %13 : vector<8xf32> to vector<8x1xf32>
    %15 = vector.broadcast %14 : vector<8x1xf32> to vector<8x8xf32>
    %16 = arith.subf %12, %15 : vector<8x8xf32>
    %17 = math.exp %16 : vector<8x8xf32>
    %cst_14 = arith.constant dense<0.000000e+00> : vector<8xf32>
    %18 = vector.multi_reduction <add>, %17, %cst_14 [1] : vector<8x8xf32> to vector<8xf32>
    %19 = vector.shape_cast %18 : vector<8xf32> to vector<8x1xf32>
    %20 = tpu.reciprocal %19 {approx = true} : vector<8x1xf32> -> vector<8x1xf32>
    %21 = vector.broadcast %20 : vector<8x1xf32> to vector<8x8xf32>
    %22 = arith.mulf %17, %21 : vector<8x8xf32>
    %23 = vector.shape_cast %22 : vector<8x8xf32> to vector<8x8x1xf32>
    %24 = vector.broadcast %23 : vector<8x8x1xf32> to vector<8x8x32xf32>
    %25 = arith.mulf %1, %24 : vector<8x8x32xf32>
    %cst_15 = arith.constant dense<0.000000e+00> : vector<8x32xf32>
    %26 = vector.multi_reduction <add>, %25, %cst_15 [1] : vector<8x8x32xf32> to vector<8x32xf32>
    %cst_16 = arith.constant dense<0.000000e+00> : vector<8x8xf32>
    %27 = tpu.matmul %26, %4, %cst_16 {dimension_numbers = #tpu.dot_dimension_numbers<[1], [0], [0], [1], [0, 0, 1, 1], [], []>} : vector<8x32xf32>, vector<32x8xf32>, vector<8x8xf32> -> vector<8x8xf32>
    %28 = vector.broadcast %6 : vector<1x8xf32> to vector<8x8xf32>
    %29 = arith.addf %27, %28 : vector<8x8xf32>
    %cst_17 = arith.constant dense<0xFF800000> : vector<8xf32>
    %30 = vector.multi_reduction <maximumf>, %29, %cst_17 [1] : vector<8x8xf32> to vector<8xf32>
    %31 = vector.shape_cast %30 : vector<8xf32> to vector<8x1xf32>
    %32 = vector.broadcast %31 : vector<8x1xf32> to vector<8x8xf32>
    %33 = arith.subf %29, %32 : vector<8x8xf32>
    %34 = math.exp %33 : vector<8x8xf32>
    %cst_18 = arith.constant dense<0.000000e+00> : vector<8xf32>
    %35 = vector.multi_reduction <add>, %34, %cst_18 [1] : vector<8x8xf32> to vector<8xf32>
    %36 = vector.shape_cast %35 : vector<8xf32> to vector<8x1xf32>
    %37 = tpu.reciprocal %36 {approx = true} : vector<8x1xf32> -> vector<8x1xf32>
    %38 = vector.broadcast %37 : vector<8x1xf32> to vector<8x8xf32>
    %39 = arith.mulf %34, %38 : vector<8x8xf32>
    %cst_19 = arith.constant dense<0.000000e+00> : vector<8x32xf32>
    %40 = tpu.matmul %39, %5, %cst_19 {dimension_numbers = #tpu.dot_dimension_numbers<[1], [0], [0], [1], [0, 0, 1, 1], [], []>} : vector<8x8xf32>, vector<8x32xf32>, vector<8x32xf32> -> vector<8x32xf32>
    %41 = vector.broadcast %7 : vector<1x32xf32> to vector<8x32xf32>
    %42 = arith.addf %40, %41 : vector<8x32xf32>
    %c0_20 = arith.constant 0 : index
    %c0_21 = arith.constant 0 : index
    %43 = vector.load %arg3[%c0_20, %c0_21] : memref<16x32xf32, #tpu.memory_space<vmem>>, vector<4x8xf32>
    %c8_22 = arith.constant 8 : index
    %c0_23 = arith.constant 0 : index
    %44 = vector.load %arg3[%c8_22, %c0_23] : memref<16x32xf32, #tpu.memory_space<vmem>>, vector<4x32xf32>
    %cst_24 = arith.constant dense<0.000000e+00> : vector<4x32xf32>
    %45 = tpu.matmul %43, %42, %cst_24 {dimension_numbers = #tpu.dot_dimension_numbers<[1], [0], [0], [1], [0, 0, 1, 1], [], []>} : vector<4x8xf32>, vector<8x32xf32>, vector<4x32xf32> -> vector<4x32xf32>
    %46 = vector.extract_strided_slice %45 {offsets = [0, 0], sizes = [2, 32], strides = [1, 1]} : vector<4x32xf32> to vector<2x32xf32>
    %47 = vector.extract_strided_slice %45 {offsets = [2, 0], sizes = [2, 32], strides = [1, 1]} : vector<4x32xf32> to vector<2x32xf32>
    %48 = vector.extract_strided_slice %44 {offsets = [0, 0], sizes = [2, 32], strides = [1, 1]} : vector<4x32xf32> to vector<2x32xf32>
    %49 = vector.extract_strided_slice %44 {offsets = [2, 0], sizes = [2, 32], strides = [1, 1]} : vector<4x32xf32> to vector<2x32xf32>
    %50 = arith.mulf %46, %47 : vector<2x32xf32>
    %cst_25 = arith.constant dense<0.000000e+00> : vector<2xf32>
    %51 = vector.multi_reduction <add>, %50, %cst_25 [1] : vector<2x32xf32> to vector<2xf32>
    %52 = vector.shape_cast %51 : vector<2xf32> to vector<2x1xf32>
    %53 = arith.mulf %48, %49 : vector<2x32xf32>
    %cst_26 = arith.constant dense<0.000000e+00> : vector<2xf32>
    %54 = vector.multi_reduction <add>, %53, %cst_26 [1] : vector<2x32xf32> to vector<2xf32>
    %55 = vector.shape_cast %54 : vector<2xf32> to vector<2x1xf32>
    %56 = arith.addf %52, %55 : vector<2x1xf32>
    %cst_27 = arith.constant 3.500000e+00 : f32
    %57 = vector.broadcast %cst_27 : f32 to vector<2x1xf32>
    %58 = arith.addf %56, %57 : vector<2x1xf32>
    %59 = vector.shape_cast %58 : vector<2x1xf32> to vector<2x1xf32>
    %60 = vector.broadcast %59 : vector<2x1xf32> to vector<2x128xf32>
    %c0_28 = arith.constant 0 : index
    %c0_29 = arith.constant 0 : index
    %61 = vector.load %arg4[%c0_28, %c0_29] : memref<2x128xf32, #tpu.memory_space<vmem>>, vector<2x128xf32>
    tpu.vector_store %arg4[%c0_28, %c0_29], %60 {strides = array<i32>} : memref<2x128xf32, #tpu.memory_space<vmem>>, vector<2x128xf32>,
    return
  }
}

</mosaic_0001>

<bundles_post_ra>
// kernel: aspect_rs_forward.1
= control target key start
LH: loop header
LB: loop body
LE: loop exit
PB: predicated region body
PF: predicated region fallthrough
CT: control target
= control target key end

     0   :  { %v974_v0 = vmov 0.0|0.0   ;;  %vm975_vm0 = vmmov 0   ;;  %v976_v4 = vmov 0.0   ;;  %vm46_vm1 = vcmask 261120   ;;  %s1226_s2 = inlined_call_operand.vmem [shape: f32[88,32], index: 2, kind: input, shape index: {}]   ;;  %s1227_s1 = inlined_call_operand.vmem [shape: f32[8,32], index: 1, kind: input, shape index: {}]   ;;  %s1228_s0 = inlined_call_operand.vmem [shape: f32[16,8,32], index: 0, kind: input, shape index: {}]   ;;  %s1229_s3 = inlined_call_operand.vmem [shape: f32[16,32], index: 3, kind: input, shape index: {}]   ;;  %s1230_s4 = inlined_call_operand.vmem [shape: f32[2,128], index: 4, kind: output, shape index: {}]  }
   0x1   :  { %933 = vmatprep.subr.bf16.mxu0 %v974_v0  ;;  %v35_v1 = vld [vmem:[%s1226_s2] sm:$0xff]  ;;  %v36_v2 = vld [vmem:[%s1226_s2 + $0x8] sm:$0xff]  ;;  %v37_v3 = vld [vmem:[%s1226_s2 + $0x10] sm:$0xff]  ;;  %909 = vmatprep.mubr.msk.f32.mxu0 %vm975_vm0, %v976_v4  ;;  %v977_v9 = vmov 1966171168   ;;  %v125_v11 = vlaneseq  ;;  %vm284_vm2 = vcmask 1041409  }
   0x2   :  { %v934_v5 = vpack.c.bf16 %v36_v2, %v35_v1  ;;  %v38_v6 = vld [vmem:[%s1226_s2 + $0x18] sm:$0xff]  ;;  %939 = vmatprep.subr.bf16.mxu1 %v974_v0  ;;  %920 = vmatprep.mubr.msk.f32.mxu1 %vm975_vm0, %v976_v4  ;;  %v34_v8 = vld [vmem:[%s1227_s1] sm:$0xff]  ;;  %v123_v10 = vunpack.c.l.s4 %v977_v9  ;;  %v18_v29 = vld [vmem:[%s1228_s0 + $0x8] sm:$0xff]  ;;  %vm286_vm3 = vcmask 1042434   ;;  %vm288_vm4 = vcmask 1043459  }
   0x3   :  { %v937_v7 = vpack.c.bf16 %v38_v6, %v37_v3  ;;  %v1030_v13 = vshrl.u32 %v125_v11, 7  ;;  %v17_v23 = vld [vmem:[%s1228_s0] sm:$0xff]  ;;  %v19_v31 = vld [vmem:[%s1228_s0 + $0x10] sm:$0xff]  ;;  %v20_v39 = vld [vmem:[%s1228_s0 + $0x18] sm:$0xff]  ;;  %v251_v63 = vand.u32 127, %v125_v11  ;;  %vm290_vm5 = vcmask 1044484  }
   0x4   :  { %935 = vmatpush3.bf16.msra.mxu0 %v934_v5  ;;  %v124_v12 = vunpack.c.0.s8 %v123_v10  ;;  %v21_v43 = vld [vmem:[%s1228_s0 + $0x20] sm:$0xff]  ;;  %v22_v50 = vld [vmem:[%s1228_s0 + $0x28] sm:$0xff]  ;;  %v23_v52 = vld [vmem:[%s1228_s0 + $0x30] sm:$0xff]  ;;  %vm292_vm6 = vcmask 1045509   ;;  %vm294_vm7 = vcmask 1046534   ;;  %vm296_vm8 = vcmask 1047559  }
   0x5   :  { %936 = vmatprep.subr.bf16.mxu0 %v974_v0  ;;  %v1034_v19 = vsub.s32 0, %v1030_v13  ;;  %v24_v58 = vld [vmem:[%s1228_s0 + $0x38] sm:$0xff]  ;;  %v1077_v2 = vsub.s32 %v251_v63, %v1030_v13  ;;  %vm299_vm9 = vcmask 64512   ;;  %vm855_vm10 = vcmask 254976  }
   0x6   :  { %v127_v14 = vsub.s32 %v124_v12, %v1030_v13 }
   0x8   :  { %938 = vmatpush3.bf16.msra.mxu0 %v937_v7 }
   0x9   :  { %923 = vmatprep.subr.mxu0 %v976_v4 }
   0xb   :  { %910 = vmatmul.mubr.msk.f32.vlgmr.msra.gmra.mrb[0].mxu0 %vm46_vm1, %v34_v8 }
   0xc   :  { %925 = vmatprep.mubr.msk.f32.mxu0 %vm975_vm0, %v976_v4 }
  0xde   :  { %v116_v15 = vpop.f32.mrb[0].mxu0 }
  0xdf   :  { %v121_v16 = vcombine.high %v116_v15, %v116_v15  ;;  %v128_v17 = vrot.slane %v116_v15, %v127_v14  ;;  %v911_v18 = vpop.f32.mrb[1].mxu0 }
  0xe1   :  { %v135_v20 = vrot.slane %v121_v16, %v127_v14  ;;  %v136_v21 = vcombine.high %v128_v17, %v128_v17  ;;  %v144_v22 = vrot.slane %v128_v17, %v127_v14 }
  0xe3   :  { %v137_v24 = vcombine.high %v135_v20, %v135_v20  ;;  %v151_v25 = vrot.slane %v135_v20, %v127_v14  ;;  %v158_v26 = vrot.slane %v136_v21, %v127_v14  ;;  %v173_v27 = vrot.slane %v144_v22, %v1034_v19 }
  0xe4   :  { %v166_v28 = vcombine.high %v144_v22, %v144_v22 }
  0xe5   :  { %v210_v30 = vmul.f32 %v173_v27, %v17_v23  ;;  %v177_v32 = vrot.slane %v158_v26, %v1034_v19  ;;  %v168_v33 = vcombine.high %v158_v26, %v158_v26  ;;  %v189_v35 = vrot.slane %v151_v25, %v1034_v19 }
  0xe6   :  { %v181_v34 = vrot.slane %v166_v28, %v1034_v19  ;;  %v165_v36 = vrot.slane %v137_v24, %v127_v14  ;;  %v167_v41 = vcombine.high %v151_v25, %v151_v25 }
  0xe7   :  { %v218_v37 = vsel %vm46_vm1, %v210_v30, 0.0  ;;  %v211_v38 = vmul.f32 %v177_v32, %v18_v29  ;;  %v185_v40 = vrot.slane %v168_v33, %v1034_v19  ;;  %v214_v49 = vmul.f32 %v189_v35, %v21_v43 }
  0xe8   :  { %219 = vadd.xlane.f32.xlu0 %v218_v37  ;;  %v212_v42 = vmul.f32 %v181_v34, %v19_v31  ;;  %v193_v46 = vrot.slane %v165_v36, %v1034_v19  ;;  %v169_v47 = vcombine.high %v165_v36, %v165_v36  ;;  %v197_v51 = vrot.slane %v167_v41, %v1034_v19 }
  0xe9   :  { %v213_v45 = vmul.f32 %v185_v40, %v20_v39  ;;  %v221_v48 = vsel %vm46_vm1, %v211_v38, 0.0  ;;  %v230_v56 = vsel %vm46_vm1, %v214_v49, 0.0  ;;  %v978_v29 = vmov 0  }
  0xea   :  { %v224_v44 = vsel %vm46_vm1, %v212_v42, 0.0  ;;  %v215_v54 = vmul.f32 %v193_v46, %v22_v50  ;;  %v201_v55 = vrot.slane %v169_v47, %v1034_v19  ;;  %v216_v57 = vmul.f32 %v197_v51, %v23_v52  ;;  %951 = vset.pattern.permute.xlu0 %v978_v29  ;;  %950 = vset.pattern.permute.xlu1 %v978_v29 }
  0xeb   :  { %225 = vadd.xlane.f32.xlu1 %v224_v44  ;;  %v227_v53 = vsel %vm46_vm1, %v213_v45, 0.0  ;;  %v310_v30 = vsub.s32 1, %v1030_v13  ;;  %v314_v31 = vsub.s32 2, %v1030_v13  ;;  %v318_v32 = vsub.s32 3, %v1030_v13 }
  0xec   :  { %222 = vadd.xlane.f32.xlu0 %v221_v48  ;;  %v233_v59 = vsel %vm46_vm1, %v215_v54, 0.0  ;;  %v217_v60 = vmul.f32 %v201_v55, %v24_v58  ;;  %v236_v61 = vsel %vm46_vm1, %v216_v57, 0.0  ;;  %v322_v37 = vsub.s32 4, %v1030_v13 }
  0xed   :  { %v326_v44 = vsub.s32 5, %v1030_v13  ;;  %v330_v48 = vsub.s32 6, %v1030_v13  ;;  %v334_v52 = vsub.s32 7, %v1030_v13  ;;  %v42_v13 = vld [vmem:[%s1226_s2 + $0x38] sm:$0xff] }
  0xee   :  { %v239_v62 = vsel %vm46_vm1, %v217_v60, 0.0 }
  0xef   :  { %228 = vadd.xlane.f32.xlu1 %v227_v53 }
  0xf0   :  { %231 = vadd.xlane.f32.xlu0 %v230_v56 }
  0xf3   :  { %234 = vadd.xlane.f32.xlu1 %v233_v59 }
  0xf4   :  { %237 = vadd.xlane.f32.xlu0 %v236_v61 }
  0xf7   :  { %240 = vadd.xlane.f32.xlu1 %v239_v62 }
 0x175   :  { %v220_v1 = vpop.xlane.xlu0 %219 }
 0x176   :  { %v255_v6 = vrot.slane %v220_v1, %v1077_v2 }
 0x178   :  { %v226_v3 = vpop.xlane.xlu1 %225 }
 0x179   :  { %v223_v5 = vpop.xlane.xlu0 %222  ;;  %v263_v8 = vrot.slane %v226_v3, %v1077_v2 }
 0x17a   :  { %v259_v7 = vrot.slane %v223_v5, %v1077_v2 }
 0x17c   :  { %v285_v9 = vsel %vm284_vm2, %v259_v7, %v255_v6  ;;  %v229_v10 = vpop.xlane.xlu1 %228 }
 0x17d   :  { %v267_v11 = vrot.slane %v229_v10, %v1077_v2  ;;  %v287_v12 = vsel %vm286_vm3, %v263_v8, %v285_v9  ;;  %v232_v14 = vpop.xlane.xlu0 %231 }
 0x17e   :  { %v271_v15 = vrot.slane %v232_v14, %v1077_v2 }
 0x17f   :  { %v289_v16 = vsel %vm288_vm4, %v267_v11, %v287_v12 }
 0x180   :  { %v291_v17 = vsel %vm290_vm5, %v271_v15, %v289_v16  ;;  %v235_v18 = vpop.xlane.xlu1 %234 }
 0x181   :  { %v275_v20 = vrot.slane %v235_v18, %v1077_v2  ;;  %v238_v21 = vpop.xlane.xlu0 %237 }
 0x182   :  { %v279_v22 = vrot.slane %v238_v21, %v1077_v2 }
 0x183   :  { %v293_v23 = vsel %vm292_vm6, %v275_v20, %v291_v17 }
 0x184   :  { %v241_v24 = vpop.xlane.xlu1 %240  ;;  %v295_v25 = vsel %vm294_vm7, %v279_v22, %v293_v23 }
 0x185   :  { %v283_v26 = vrot.slane %v241_v24, %v1077_v2 }
 0x187   :  { %v297_v27 = vsel %vm296_vm8, %v283_v26, %v295_v25 }
 0x188   :  { %v300_v28 = vsel %vm299_vm9, %v297_v27, -inf }
 0x189   :  { %301 = vmax.xlane.f32.xlu0 %v300_v28 }
 0x216   :  { %v302_v33 = vpop.xlane.xlu0 %301 }
 0x217   :  { %v307_v34 = vrot.slane %v302_v33, %v1034_v19  ;;  %v311_v35 = vrot.slane %v302_v33, %v310_v30  ;;  %v315_v36 = vrot.slane %v302_v33, %v314_v31  ;;  %v319_v38 = vrot.slane %v302_v33, %v318_v32 }
 0x218   :  { %v323_v45 = vrot.slane %v302_v33, %v322_v37  ;;  %v327_v49 = vrot.slane %v302_v33, %v326_v44  ;;  %v331_v53 = vrot.slane %v302_v33, %v330_v48  ;;  %v335_v58 = vrot.slane %v302_v33, %v334_v52 }
 0x219   :  { %v344_v39 = vsub.f32 %v220_v1, %v307_v34  ;;  %v345_v40 = vsub.f32 %v223_v5, %v311_v35  ;;  %v346_v41 = vsub.f32 %v226_v3, %v315_v36  ;;  %v347_v46 = vsub.f32 %v229_v10, %v319_v38 }
 0x21a   :  { %v348_v50 = vsub.f32 %v232_v14, %v323_v45  ;;  %v349_v54 = vsub.f32 %v235_v18, %v327_v49  ;;  %v350_v59 = vsub.f32 %v238_v21, %v331_v53  ;;  %v351_v62 = vsub.f32 %v241_v24, %v335_v58 }
 0x21b   :  { %v352_v42 = vmul.f32 1.442695, %v344_v39  ;;  %v354_v43 = vmul.f32 1.442695, %v345_v40  ;;  %v356_v47 = vmul.f32 1.442695, %v346_v41 }
 0x21c   :  { %v358_v51 = vmul.f32 1.442695, %v347_v46  ;;  %v360_v55 = vmul.f32 1.442695, %v348_v50  ;;  %v362_v60 = vmul.f32 1.442695, %v349_v54 }
 0x21d   :  { %952 = vpow2.f32 %v352_v42  ;;  %v364_v63 = vmul.f32 1.442695, %v350_v59  ;;  %v366_v3 = vmul.f32 1.442695, %v351_v62  ;;  %v873_v59 = vld [vmem:[%s1228_s0 + $0x40] sm:$0xff] }
 0x21e   :  { %954 = vpow2.f32 %v354_v43 }
 0x21f   :  { %956 = vpow2.f32 %v356_v47 }
 0x220   :  { %958 = vpow2.f32 %v358_v51 }
 0x221   :  { %960 = vpow2.f32 %v360_v55 }
 0x222   :  { %962 = vpow2.f32 %v362_v60  ;;  %v875_v60 = vld [vmem:[%s1228_s0 + $0x50] sm:$0xff] }
 0x223   :  { %964 = vpow2.f32 %v364_v63 }
 0x224   :  { %966 = vpow2.f32 %v366_v3 }
 0x227   :  { %v953_v56 = vpop.eup %952 }
 0x228   :  { %v955_v57 = vpop.eup %954  ;;  %377 = vperm.xlu1 %950, %v953_v56  }
 0x229   :  { %380 = vperm.xlu0 %951, %v955_v57   ;;  %v957_v61 = vpop.eup %956 }
 0x22a   :  { %v959_v1 = vpop.eup %958 }
 0x22b   :  { %v961_v5 = vpop.eup %960 }
 0x22c   :  { %383 = vperm.xlu1 %950, %v957_v61   ;;  %v963_v6 = vpop.eup %962 }
 0x22d   :  { %v965_v7 = vpop.eup %964 }
 0x22e   :  { %v967_v8 = vpop.eup %966 }
 0x230   :  { %386 = vperm.xlu1 %950, %v959_v1  }
 0x234   :  { %389 = vperm.xlu1 %950, %v961_v5  }
 0x238   :  { %392 = vperm.xlu1 %950, %v963_v6  }
 0x23c   :  { %395 = vperm.xlu1 %950, %v965_v7  }
 0x240   :  { %398 = vperm.xlu1 %950, %v967_v8  }
 0x2a7   :  { %v378_v9 = vpop.permute.xlu1 %377 }
 0x2a8   :  { %v381_v14 = vpop.permute.xlu0 %380  ;;  %v403_v17 = vrot.slane %v378_v9, %v1077_v2 }
 0x2a9   :  { %v407_v16 = vrot.slane %v381_v14, %v1077_v2 }
 0x2ab   :  { %v384_v10 = vpop.permute.xlu1 %383  ;;  %v432_v23 = vsel %vm284_vm2, %v407_v16, %v403_v17 }
 0x2ac   :  { %v411_v18 = vrot.slane %v384_v10, %v1077_v2  ;;  %v877_v10 = vld [vmem:[%s1228_s0 + $0x60] sm:$0xff] }
 0x2ae   :  { %v433_v25 = vsel %vm286_vm3, %v411_v18, %v432_v23 }
 0x2af   :  { %v387_v11 = vpop.permute.xlu1 %386 }
 0x2b0   :  { %v415_v20 = vrot.slane %v387_v11, %v1077_v2 }
 0x2b2   :  { %v434_v27 = vsel %vm288_vm4, %v415_v20, %v433_v25  ;;  %v878_v20 = vld [vmem:[%s1228_s0 + $0x68] sm:$0xff] }
 0x2b3   :  { %v390_v12 = vpop.permute.xlu1 %389 }
 0x2b4   :  { %v419_v21 = vrot.slane %v390_v12, %v1077_v2 }
 0x2b6   :  { %v435_v28 = vsel %vm290_vm5, %v419_v21, %v434_v27 }
 0x2b7   :  { %v393_v15 = vpop.permute.xlu1 %392 }
 0x2b8   :  { %v423_v24 = vrot.slane %v393_v15, %v1077_v2 }
 0x2ba   :  { %v436_v33 = vsel %vm292_vm6, %v423_v24, %v435_v28 }
 0x2bb   :  { %v396_v22 = vpop.permute.xlu1 %395 }
 0x2bc   :  { %v427_v26 = vrot.slane %v396_v22, %v1077_v2 }
 0x2be   :  { %v437_v35 = vsel %vm294_vm7, %v427_v26, %v436_v33  ;;  %v879_v33 = vld [vmem:[%s1228_s0 + $0x70] sm:$0xff] }
 0x2bf   :  { %v399_v29 = vpop.permute.xlu1 %398 }
 0x2c0   :  { %v431_v34 = vrot.slane %v399_v29, %v1077_v2 }
 0x2c2   :  { %v438_v36 = vsel %vm296_vm8, %v431_v34, %v437_v35 }
 0x2c3   :  { %v440_v38 = vsel %vm299_vm9, %v438_v36, 0.0 }
 0x2c4   :  { %441 = vadd.xlane.f32.xlu1 %v440_v38 }
 0x351   :  { %v442_v39 = vpop.xlane.xlu1 %441 }
 0x352   :  { %968 = vrcp.f32 %v442_v39 }
 0x35c   :  { %v969_v40 = vpop.eup %968 }
 0x35d   :  { %v448_v41 = vrot.slane %v969_v40, %v1034_v19  ;;  %v452_v43 = vrot.slane %v969_v40, %v310_v30  ;;  %v456_v2 = vrot.slane %v969_v40, %v314_v31  ;;  %v460_v47 = vrot.slane %v969_v40, %v318_v32 }
 0x35e   :  { %v464_v50 = vrot.slane %v969_v40, %v322_v37  ;;  %v468_v30 = vrot.slane %v969_v40, %v326_v44  ;;  %v472_v31 = vrot.slane %v969_v40, %v330_v48  ;;  %v476_v32 = vrot.slane %v969_v40, %v334_v52  ;;  %v39_v37 = vld [vmem:[%s1226_s2 + $0x20] sm:$0xff]  ;;  %v40_v44 = vld [vmem:[%s1226_s2 + $0x28] sm:$0xff]  ;;  %v41_v48 = vld [vmem:[%s1226_s2 + $0x30] sm:$0xff] }
 0x35f   :  { %v485_v42 = vmul.f32 %v953_v56, %v448_v41  ;;  %v486_v45 = vmul.f32 %v955_v57, %v452_v43  ;;  %v487_v46 = vmul.f32 %v957_v61, %v456_v2  ;;  %v488_v49 = vmul.f32 %v959_v1, %v460_v47  ;;  %v874_v57 = vld [vmem:[%s1228_s0 + $0x48] sm:$0xff]  ;;  %v876_v1 = vld [vmem:[%s1228_s0 + $0x58] sm:$0xff] }
 0x360   :  { %v489_v19 = vmul.f32 %v961_v5, %v464_v50  ;;  %v490_v51 = vmul.f32 %v963_v6, %v468_v30  ;;  %v491_v53 = vmul.f32 %v965_v7, %v472_v31  ;;  %v492_v54 = vmul.f32 %v967_v8, %v476_v32  ;;  %v880_v2 = vld [vmem:[%s1228_s0 + $0x78] sm:$0xff] }
 0x361   :  { %495 = vperm.xlu0 %951, %v485_v42   ;;  %v940_v55 = vpack.c.bf16 %v40_v44, %v39_v37  ;;  %v943_v52 = vpack.c.bf16 %v42_v13, %v41_v48 }
 0x363   :  { %941 = vmatpush3.bf16.msra.mxu1 %v940_v55 }
 0x364   :  { %942 = vmatprep.subr.bf16.mxu1 %v974_v0 }
 0x365   :  { %500 = vperm.xlu0 %951, %v486_v45  }
 0x367   :  { %944 = vmatpush3.bf16.msra.mxu1 %v943_v52 }
 0x368   :  { %928 = vmatprep.subr.mxu1 %v976_v4 }
 0x369   :  { %505 = vperm.xlu0 %951, %v487_v46  }
 0x36d   :  { %510 = vperm.xlu0 %951, %v488_v49  }
 0x371   :  { %515 = vperm.xlu0 %951, %v489_v19  }
 0x375   :  { %520 = vperm.xlu0 %951, %v490_v51  }
 0x379   :  { %525 = vperm.xlu0 %951, %v491_v53  }
 0x37d   :  { %530 = vperm.xlu0 %951, %v492_v54  }
 0x3e0   :  { %v496_v56 = vpop.permute.xlu0 %495 }
 0x3e1   :  { %v533_v0 = vmul.f32 %v873_v59, %v496_v56 }
 0x3e3   :  { %v541_v7 = vsel %vm46_vm1, %v533_v0, 0.0 }
 0x3e4   :  { %v501_v58 = vpop.permute.xlu0 %500  ;;  %v542_v14 = vrot.slane %v541_v7, 4 }
 0x3e5   :  { %v534_v61 = vmul.f32 %v874_v57, %v501_v58 }
 0x3e6   :  { %v543_v23 = vadd.f32 %v542_v14, %v541_v7 }
 0x3e7   :  { %v548_v3 = vsel %vm46_vm1, %v534_v61, 0.0 }
 0x3e8   :  { %v506_v62 = vpop.permute.xlu0 %505  ;;  %v549_v9 = vrot.slane %v548_v3, 4  ;;  %v544_v36 = vrot.slane %v543_v23, 2 }
 0x3e9   :  { %v535_v63 = vmul.f32 %v875_v60, %v506_v62 }
 0x3ea   :  { %v550_v18 = vadd.f32 %v549_v9, %v548_v3  ;;  %v545_v49 = vadd.f32 %v544_v36, %v543_v23  ;;  %v884_v36 = vld [vmem:[%s1226_s2 + $0x50] ss:$0 sm:$0xff] }
 0x3eb   :  { %v555_v5 = vsel %vm46_vm1, %v535_v63, 0.0 }
 0x3ec   :  { %v511_v6 = vpop.permute.xlu0 %510  ;;  %v556_v11 = vrot.slane %v555_v5, 4  ;;  %v551_v28 = vrot.slane %v550_v18, 2  ;;  %v546_v55 = vrot.slane %v545_v49, 1 }
 0x3ed   :  { %v536_v8 = vmul.f32 %v876_v1, %v511_v6 }
 0x3ee   :  { %v557_v21 = vadd.f32 %v556_v11, %v555_v5  ;;  %v552_v43 = vadd.f32 %v551_v28, %v550_v18  ;;  %v547_v0 = vadd.f32 %v546_v55, %v545_v49 }
 0x3ef   :  { %v562_v12 = vsel %vm46_vm1, %v536_v8, 0.0 }
 0x3f0   :  { %v563_v15 = vrot.slane %v562_v12, 4  ;;  %v516_v16 = vpop.permute.xlu0 %515  ;;  %v558_v34 = vrot.slane %v557_v21, 2  ;;  %v553_v32 = vrot.slane %v552_v43, 1 }
 0x3f1   :  { %v537_v17 = vmul.f32 %v877_v10, %v516_v16 }
 0x3f2   :  { %v564_v24 = vadd.f32 %v563_v15, %v562_v12  ;;  %v559_v46 = vadd.f32 %v558_v34, %v557_v21  ;;  %v554_v58 = vadd.f32 %v553_v32, %v552_v43 }
 0x3f3   :  { %v569_v22 = vsel %vm46_vm1, %v537_v17, 0.0 }
 0x3f4   :  { %v570_v25 = vrot.slane %v569_v22, 4  ;;  %v521_v26 = vpop.permute.xlu0 %520  ;;  %v565_v38 = vrot.slane %v564_v24, 2  ;;  %v560_v44 = vrot.slane %v559_v46, 1  ;;  %v609_v6 = vsel %vm284_vm2, %v554_v58, %v547_v0 }
 0x3f5   :  { %v538_v27 = vmul.f32 %v878_v20, %v521_v26  ;;  %v882_v20 = vld [vmem:[%s1226_s2 + $0x48] ss:$0 sm:$0xff] }
 0x3f6   :  { %v571_v29 = vadd.f32 %v570_v25, %v569_v22  ;;  %v566_v50 = vadd.f32 %v565_v38, %v564_v24  ;;  %v561_v62 = vadd.f32 %v560_v44, %v559_v46 }
 0x3f7   :  { %v576_v35 = vsel %vm46_vm1, %v538_v27, 0.0 }
 0x3f8   :  { %v577_v39 = vrot.slane %v576_v35, 4  ;;  %v526_v40 = vpop.permute.xlu0 %525  ;;  %v572_v41 = vrot.slane %v571_v29, 2  ;;  %v567_v13 = vrot.slane %v566_v50, 1  ;;  %v610_v9 = vsel %vm286_vm3, %v561_v62, %v609_v6 }
 0x3f9   :  { %v539_v42 = vmul.f32 %v879_v33, %v526_v40 }
 0x3fa   :  { %v578_v45 = vadd.f32 %v577_v39, %v576_v35  ;;  %v573_v31 = vadd.f32 %v572_v41, %v571_v29  ;;  %v568_v63 = vadd.f32 %v567_v13, %v566_v50  ;;  %v776_v41 = vld [vmem:[%s1229_s3] sm:$0xf] }
 0x3fb   :  { %v583_v47 = vsel %vm46_vm1, %v539_v42, 0.0  ;;  %v777_v42 = vld [vmem:[%s1229_s3 + $0x8] sm:$0xf] }
 0x3fc   :  { %v579_v19 = vrot.slane %v578_v45, 2  ;;  %v584_v30 = vrot.slane %v583_v47, 4  ;;  %v531_v51 = vpop.permute.xlu0 %530  ;;  %v574_v57 = vrot.slane %v573_v31, 1  ;;  %v611_v11 = vsel %vm288_vm4, %v568_v63, %v610_v9 }
 0x3fd   :  { %v540_v53 = vmul.f32 %v880_v2, %v531_v51  ;;  %v860_v43 = vrot.slane %v777_v42, 2 }
 0x3fe   :  { %v580_v54 = vadd.f32 %v579_v19, %v578_v45  ;;  %v585_v37 = vadd.f32 %v584_v30, %v583_v47  ;;  %v575_v5 = vadd.f32 %v574_v57, %v573_v31 }
 0x3ff   :  { %v590_v48 = vsel %vm46_vm1, %v540_v53, 0.0  ;;  %v862_v49 = vmul.f32 %v860_v43, %v777_v42 }
 0x400   :  { %v586_v52 = vrot.slane %v585_v37, 2  ;;  %v591_v56 = vrot.slane %v590_v48, 4  ;;  %v581_v59 = vrot.slane %v580_v54, 1  ;;  %v612_v14 = vsel %vm290_vm5, %v575_v5, %v611_v11 }
 0x401   :  { %v863_v19 = vsel %vm855_vm10, %v862_v49, 0.0 }
 0x402   :  { %v587_v60 = vadd.f32 %v586_v52, %v585_v37  ;;  %v592_v61 = vadd.f32 %v591_v56, %v590_v48  ;;  %v582_v7 = vadd.f32 %v581_v59, %v580_v54 }
 0x404   :  { %v588_v1 = vrot.slane %v587_v60, 1  ;;  %v593_v3 = vrot.slane %v592_v61, 2  ;;  %v613_v16 = vsel %vm292_vm6, %v582_v7, %v612_v14 }
 0x406   :  { %v594_v8 = vadd.f32 %v593_v3, %v592_v61  ;;  %v589_v10 = vadd.f32 %v588_v1, %v587_v60 }
 0x408   :  { %v595_v12 = vrot.slane %v594_v8, 1  ;;  %v614_v17 = vsel %vm294_vm7, %v589_v10, %v613_v16 }
 0x40a   :  { %v596_v15 = vadd.f32 %v595_v12, %v594_v8 }
 0x40c   :  { %v615_v18 = vsel %vm296_vm8, %v596_v15, %v614_v17 }
 0x40d   :  { %921 = vmatmul.mubr.msk.f32.vlgmr.msra.gmra.mrb[0].mxu1 %vm46_vm1, %v615_v18 }
 0x40e   :  { %930 = vmatprep.mubr.msk.f32.mxu1 %vm975_vm0, %v976_v4  ;;  %v43_v4 = vld [vmem:[%s1226_s2 + $0x40] sm:$0xff] }
 0x40f   :  { %924 = vmatpush3.msra.mxu0 %v43_v4 }
 0x4e0   :  { %v684_v21 = vpop.f32.mrb[0].mxu1 }
 0x4e1   :  { %v685_v22 = vadd.f32 %v882_v20, %v684_v21  ;;  %v922_v23 = vpop.f32.mrb[1].mxu1 }
 0x4e3   :  { %v688_v24 = vsel %vm299_vm9, %v685_v22, -inf }
 0x4e4   :  { %689 = vmax.xlane.f32.xlu1 %v688_v24 }
 0x571   :  { %v690_v25 = vpop.xlane.xlu1 %689 }
 0x572   :  { %v691_v26 = vsub.f32 %v685_v22, %v690_v25 }
 0x574   :  { %v692_v27 = vmul.f32 1.442695, %v691_v26 }
 0x576   :  { %970 = vpow2.f32 %v692_v27 }
 0x580   :  { %v971_v28 = vpop.eup %970 }
 0x581   :  { %v694_v29 = vsel %vm299_vm9, %v971_v28, 0.0 }
 0x582   :  { %695 = vadd.xlane.f32.xlu0 %v694_v29 }
 0x60f   :  { %v696_v33 = vpop.xlane.xlu0 %695 }
 0x610   :  { %972 = vrcp.f32 %v696_v33 }
 0x61a   :  { %v973_v34 = vpop.eup %972 }
 0x61b   :  { %v698_v35 = vmul.f32 %v973_v34, %v971_v28 }
 0x61d   :  { %926 = vmatmul.mubr.msk.f32.vlgmr.msra.gmra.mrb[2].mxu0 %vm299_vm9, %v698_v35 }
 0x6f0   :  { %v772_v38 = vpop.f32.mrb[2].mxu0 }
 0x6f1   :  { %v773_v39 = vadd.f32 %v884_v36, %v772_v38  ;;  %v927_v40 = vpop.f32.mrb[3].mxu0 }
 0x6f3   :  { %929 = vmatpush3.msra.mxu1 %v773_v39 }
 0x6f4   :  { %931 = vmatmul.mubr.msk.f32.vlgmr.msra.gmra.mrb[2].mxu1 %vm299_vm9, %v776_v41 }
 0x7c7   :  { %v847_v45 = vpop.f32.mrb[2].mxu1 }
 0x7c8   :  { %v852_v2 = vrot.slane %v847_v45, 2  ;;  %v932_v46 = vpop.f32.mrb[3].mxu1 }
 0x7ca   :  { %v854_v47 = vmul.f32 %v852_v2, %v847_v45 }
 0x7cc   :  { %v856_v50 = vsel %vm855_vm10, %v854_v47, 0.0 }
 0x7cd   :  { %857 = vadd.xlane.f32.xlu1 %v856_v50 }
 0x7d1   :  { %864 = vadd.xlane.f32.xlu1 %v863_v19 }
 0x85a   :  { %v858_v30 = vpop.xlane.xlu1 %857 }
 0x85e   :  { %v865_v51 = vpop.xlane.xlu1 %864 }
 0x85f   :  { %v866_v31 = vadd.f32 %v865_v51, %v858_v30 }
 0x861   :  { %v867_v53 = vadd.f32 3.5, %v866_v31 }
 0x863   :  { %868 = vst [vmem:[%s1230_s4] sm:$0x3] %v867_v53 }

</bundles_post_ra>
